<compile_context>
chip_gen: v5e
topology: v5e:2x2
jax: 0.10.0
libtpu: 0.0.40
codegen_flags: <defaults>
</compile_context>

<pallas_src>
import jax
import jax.numpy as jnp
from jax.experimental import pallas as pl
from jax.experimental.pallas import tpu as pltpu


def _round_up(x, m):
    return (x + m - 1) // m * m


def _pad2d(x, rows, cols):
    r, c = x.shape
    return jnp.pad(x, ((0, rows - r), (0, cols - c)))


# ------------------------- context_processor kernel --------------------------
def context_kernel(ctx_ref, wc_ref, bc_ref, out_ref):
    # Linear(H -> H): ctx @ Wc + bc   (bf16 operands, f32 accumulation)
    out_ref[...] = (
        jnp.dot(ctx_ref[...].astype(jnp.bfloat16), wc_ref[...],
                preferred_element_type=jnp.float32)
        + bc_ref[...]
    )


def context_processor_pallas(context, wc_bf16, bc_f32):
    B, H = context.shape
    vmem = pl.BlockSpec(memory_space=pltpu.MemorySpace.VMEM)
    return pl.pallas_call(
        context_kernel,
        out_shape=jax.ShapeDtypeStruct((B, H), jnp.float32),
        in_specs=[vmem, vmem, vmem],
        out_specs=vmem,
    )(context, wc_bf16, bc_f32)


# ---------------- fused reasoning_head + output_projector kernel -------------
def fused_reasoning_kernel(h_ref, ctxb_ref, wr_ref, br_ref, wo_ref, bo_ref,
                           logits_ref, reason_ref, rbuf):
    # grid = (M tiles, V tiles); V is the inner ("arbitrary") axis.
    @pl.when(pl.program_id(1) == 0)
    def _():
        # context broadcast-add in f32, then one [tm, Hp] x [Hp, Hp] MXU matmul.
        h = h_ref[...] + ctxb_ref[...]
        reason = (
            jnp.dot(h.astype(jnp.bfloat16), wr_ref[...],
                    preferred_element_type=jnp.float32)
            + br_ref[...]
        )
        reason_ref[...] = reason                    # f32 reasoning output tile
        rbuf[...] = reason.astype(jnp.bfloat16)     # resident operand for the V sweep

    # output_projector tile: [tm, Hp] x [Hp, tv] MXU matmul; bias sliced per V tile.
    logits_ref[...] = (
        jnp.dot(rbuf[...], wo_ref[...], preferred_element_type=jnp.float32)
        + bo_ref[...]
    )


def reasoning_forward_pallas(hidden_states, ctx_feat, params):
    """hidden_states [B,S,H] f32, ctx_feat [B,H] f32 or None ->
       (logits [B,S,V] f32, reasoning [B,S,H] f32)."""
    B, S, H = hidden_states.shape
    V = params["wo"].shape[1]
    M = B * S

    # Padded / tiled sizes: lane-dense last dims, sublane-aligned M tiles.
    Hp = _round_up(H, 128)
    tm = min(256, _round_up(M, 8))
    Mp = _round_up(M, tm)
    tv = min(512, _round_up(V, 128))
    Vp = _round_up(V, tv)

    h_flat = _pad2d(hidden_states.reshape(M, H).astype(jnp.float32), Mp, Hp)
    if ctx_feat is None:
        ctxb = jnp.zeros((Mp, Hp), jnp.float32)       # adding 0.0 is exact
    else:
        ctxb = _pad2d(
            jnp.broadcast_to(ctx_feat[:, None, :], (B, S, H)).reshape(M, H),
            Mp, Hp)

    wr = _pad2d(params["wr"], Hp, Hp)                 # bf16, zero-padded
    br = _pad2d(params["br"], 1, Hp)                  # f32
    wo = _pad2d(params["wo"], Hp, Vp)                 # bf16, zero-padded
    bo = _pad2d(params["bo"], 1, Vp)                  # f32

    grid = (Mp // tm, Vp // tv)

    logits_p, reason_p = pl.pallas_call(
        fused_reasoning_kernel,
        out_shape=(
            jax.ShapeDtypeStruct((Mp, Vp), jnp.float32),
            jax.ShapeDtypeStruct((Mp, Hp), jnp.float32),
        ),
        grid_spec=pltpu.PrefetchScalarGridSpec(
            num_scalar_prefetch=0,
            grid=grid,
            in_specs=[
                pl.BlockSpec((tm, Hp), lambda m, v: (m, 0)),   # hidden tile
                pl.BlockSpec((tm, Hp), lambda m, v: (m, 0)),   # broadcast ctx tile
                pl.BlockSpec((Hp, Hp), lambda m, v: (0, 0)),   # Wr (resident)
                pl.BlockSpec((1, Hp), lambda m, v: (0, 0)),    # br
                pl.BlockSpec((Hp, tv), lambda m, v: (0, v)),   # Wo V-slice
                pl.BlockSpec((1, tv), lambda m, v: (0, v)),    # bo V-slice
            ],
            out_specs=[
                pl.BlockSpec((tm, tv), lambda m, v: (m, v)),   # logits tile
                pl.BlockSpec((tm, Hp), lambda m, v: (m, 0)),   # reasoning (resident over V)
            ],
            scratch_shapes=[pltpu.VMEM((tm, Hp), jnp.bfloat16)],
        ),
        compiler_params=pltpu.CompilerParams(
            dimension_semantics=("parallel", "arbitrary"),
            vmem_limit_bytes=48 * 1024 * 1024,   # fits v5e/v6e/v7x budgets
        ),
    )(h_flat, ctxb, wr, br, wo, bo)

    logits = logits_p[:M, :V].reshape(B, S, V)
    reasoning = reason_p[:M, :H].reshape(B, S, H)
    return logits, reasoning


# ----------------------------- plain-JAX glue --------------------------------
# TODO(synk): BaseModel is undefined in the reference spec; synthesized as a
# deterministic embedding lookup + mean pooling (plain JAX, not a kernel).
def synthetic_base_model(input_ids, embed_table, attention_mask=None):
    hidden_states = jnp.take(embed_table, input_ids, axis=0)      # [B, S, H]
    if attention_mask is not None:
        m = attention_mask[..., None].astype(hidden_states.dtype)
        pooled = (hidden_states * m).sum(1) / jnp.maximum(m.sum(1), 1.0)
    else:
        pooled = hidden_states.mean(axis=1)
    return hidden_states, pooled


def init_params(key, hidden_size, vocab_size):
    """nn.Linear-style init; weights stored pre-transposed [in, out] in bf16."""
    ks = jax.random.split(key, 7)

    def linear(kw, kb, fan_in, fan_out):
        bound = 1.0 / jnp.sqrt(fan_in)
        w = jax.random.uniform(kw, (fan_in, fan_out), jnp.float32, -bound, bound)
        b = jax.random.uniform(kb, (1, fan_out), jnp.float32, -bound, bound)
        return w.astype(jnp.bfloat16), b

    wc, bc = linear(ks[0], ks[1], hidden_size, hidden_size)   # context_processor
    wr, br = linear(ks[2], ks[3], hidden_size, hidden_size)   # reasoning_head
    wo, bo = linear(ks[4], ks[5], hidden_size, vocab_size)    # output_projector
    embed = jax.random.normal(ks[6], (vocab_size, hidden_size), jnp.float32) * 0.02
    return {"wc": wc, "bc": bc, "wr": wr, "br": br, "wo": wo, "bo": bo,
            "embed": embed}


def reasoning_module_forward(input_ids, params, attention_mask=None,
                             context=None, deterministic=True):
    del deterministic
    hidden_states, _pooled = synthetic_base_model(
        input_ids, params["embed"], attention_mask)
    if context is not None:
        ctx_feat = context_processor_pallas(context, params["wc"], params["bc"])
    else:
        ctx_feat = None   # reference skips the entire context branch
    return reasoning_forward_pallas(hidden_states, ctx_feat, params)


# ---------------------------------- main -------------------------------------
if __name__ == "__main__":
    B, S, H, V = 2, 8, 32, 128

    key = jax.random.PRNGKey(0)
    k_par, k_ids, k_ctx = jax.random.split(key, 3)

    params = init_params(k_par, hidden_size=H, vocab_size=V)
    input_ids = jax.random.randint(k_ids, (B, S), 0, V, dtype=jnp.int32)
    context = jax.random.normal(k_ctx, (B, H), jnp.float32)

    logits, reasoning = reasoning_module_forward(input_ids, params, context=context)
    jax.block_until_ready((logits, reasoning))

    # Plain-JAX reference mirroring the kernel's bf16-operand / f32-accum matmuls.
    hs, _ = synthetic_base_model(input_ids, params["embed"])
    ctx_feat_ref = jnp.dot(context.astype(jnp.bfloat16), params["wc"],
                           preferred_element_type=jnp.float32) + params["bc"]
    h_ref = hs + ctx_feat_ref[:, None, :]
    reason_ref = jnp.einsum("bsh,hk->bsk", h_ref.astype(jnp.bfloat16), params["wr"],
                            preferred_element_type=jnp.float32) + params["br"]
    logits_ref = jnp.einsum("bsh,hv->bsv", reason_ref.astype(jnp.bfloat16), params["wo"],
                            preferred_element_type=jnp.float32) + params["bo"]

    assert logits.shape == (B, S, V) and reasoning.shape == (B, S, H)
    assert jnp.allclose(reasoning, reason_ref, atol=1e-3, rtol=1e-3)
    assert jnp.allclose(logits, logits_ref, atol=1e-3, rtol=1e-3)

    # context=None path must skip the context branch entirely (no bias leak).
    logits0, reasoning0 = reasoning_module_forward(input_ids, params)
    jax.block_until_ready((logits0, reasoning0))
    reason0_ref = jnp.einsum("bsh,hk->bsk", hs.astype(jnp.bfloat16), params["wr"],
                             preferred_element_type=jnp.float32) + params["br"]
    assert jnp.allclose(reasoning0, reason0_ref, atol=1e-3, rtol=1e-3)

    print("KERNEL_OK")
</pallas_src>

<mosaic_0001>
module attributes {stable_mosaic.version = 11 : i64} {
  func.func @context_kernel(%arg0: memref<2x32xf32, #tpu.memory_space<vmem>>, %arg1: memref<32x32xbf16, #tpu.memory_space<vmem>>, %arg2: memref<1x32xf32, #tpu.memory_space<vmem>>, %arg3: memref<2x32xf32, #tpu.memory_space<vmem>>) attributes {dimension_semantics = [], scalar_prefetch = 0 : i64, scratch_operands = 0 : i64, tpu.core_type = #tpu.core_type<tc>} {
    %c0 = arith.constant 0 : index
    %c0_0 = arith.constant 0 : index
    %0 = vector.load %arg0[%c0, %c0_0] : memref<2x32xf32, #tpu.memory_space<vmem>>, vector<2x32xf32>
    %1 = arith.truncf %0 : vector<2x32xf32> to vector<2x32xbf16>
    %c0_1 = arith.constant 0 : index
    %c0_2 = arith.constant 0 : index
    %2 = vector.load %arg1[%c0_1, %c0_2] : memref<32x32xbf16, #tpu.memory_space<vmem>>, vector<32x32xbf16>
    %cst = arith.constant dense<0.000000e+00> : vector<2x32xf32>
    %3 = tpu.matmul %1, %2, %cst {dimension_numbers = #tpu.dot_dimension_numbers<[1], [0], [0], [1], [0, 0, 1, 1], [], []>} : vector<2x32xbf16>, vector<32x32xbf16>, vector<2x32xf32> -> vector<2x32xf32>
    %c0_3 = arith.constant 0 : index
    %c0_4 = arith.constant 0 : index
    %4 = vector.load %arg2[%c0_3, %c0_4] : memref<1x32xf32, #tpu.memory_space<vmem>>, vector<1x32xf32>
    %5 = vector.broadcast %4 : vector<1x32xf32> to vector<2x32xf32>
    %6 = arith.addf %3, %5 : vector<2x32xf32>
    %c0_5 = arith.constant 0 : index
    %c0_6 = arith.constant 0 : index
    %7 = vector.load %arg3[%c0_5, %c0_6] : memref<2x32xf32, #tpu.memory_space<vmem>>, vector<2x32xf32>
    tpu.vector_store %arg3[%c0_5, %c0_6], %6 {strides = array<i32>} : memref<2x32xf32, #tpu.memory_space<vmem>>, vector<2x32xf32>,
    return
  }
}

</mosaic_0001>

<bundles_post_ra>
// kernel: tpu_custom_call.1
= control target key start
LH: loop header
LB: loop body
LE: loop exit
PB: predicated region body
PF: predicated region fallthrough
CT: control target
= control target key end

     0   :  { %8 = vsyncpa [#allocation3], 0  ;;  %s237_s0 = inlined_call_operand.hbm [shape: f32[2,32], index: 0, kind: input, shape index: {}]   ;;  %s238_s1 = inlined_call_operand.hbm [shape: bf16[32,32], index: 1, kind: input, shape index: {}]   ;;  %s239_s2 = inlined_call_operand.vmem [shape: f32[1,32], index: 2, kind: input, shape index: {}]   ;;  %s240_s3 = inlined_call_operand.hbm [shape: f32[2,32], index: 3, kind: output, shape index: {}]  }
   0x1   :  { %9 = vsyncpa [#allocation6], 0 }
   0x2   :  { %10 = vsyncpa [#allocation4], 0  ;;  %s16_s14 = sshll.u32 %s237_s0, 4  ;;  %s200_s15 = smov [#allocation2]   ;;  %s17_s14 = int_to_ptr.hbm [resolvable:$true] %s16_s14 }
   0x3   :  { %s18_s16 = sshll.u32 %s200_s15, 4  ;;  %s26_s19 = sshll.u32 %s238_s1, 4  ;;  %s19_s16 = int_to_ptr.vmem [resolvable:$true] %s18_s16  ;;  %s27_s19 = int_to_ptr.hbm [resolvable:$true] %s26_s19 }
   0x4   :  { %21 = dma.hbm_to_vmem [thread:$0]  %s17_s14, 32, %s19_s16, [#allocation3]  }
   0x5   :  { %s201_s20 = smov [#allocation5]   ;;  %s202_s22 = smov 64  }
   0x6   :  { %s28_s21 = sshll.u32 %s201_s20, 4  ;;  %s203_s23 = smov 4   ;;  %s29_s21 = int_to_ptr.vmem [resolvable:$true] %s28_s21 }
   0x7   :  { %34 = dma.hbm_to_vmem [thread:$0]  %s27_s19, 256, %s29_s21, [#allocation6], %s202_s22, %s202_s22, %s203_s23  }
   0x8   :  { %194 = dma.done.wait [#allocation3], 32  }
   0x9   :  { %195 = vsyncadd [#allocation3], 4294967264 }
   0xa   :  { %196 = dma.done.wait [#allocation6], 256  }
   0xb   :  { %197 = vsyncadd [#allocation6], 4294967040  ;;  %v115_v0 = vld [vmem:[#allocation5 + $0x8] sm:$0xff]  ;;  %v114_v1 = vld [vmem:[#allocation5] sm:$0xff]  ;;  %vm68_vm0 = vcmask 261120   ;;  %s204_s24 = smov [#allocation7]  }
   0xc   :  { %78 = vmatpush.bf16.msra.mxu0 %v115_v0  ;;  %v46_v2 = vld [vmem:[#allocation2] sm:$0x3]  ;;  %s92_s25 = sshll.u32 %s204_s24, 4  ;;  %s94_s28 = sshll.u32 %s240_s3, 4  ;;  %vm85_vm1 = vcmask 254976   ;;  %s93_s25 = int_to_ptr.vmem [resolvable:$true] %s92_s25  ;;  %s95_s28 = int_to_ptr.hbm [resolvable:$true] %s94_s28 }
   0xd   :  { %v47_v3 = vpack.c.bf16 %v46_v2, %v46_v2  ;;  %v121_v4 = vld [vmem:[%s239_s2] ss:$0 sm:$0xff] }
  0x10   :  { %79 = vmatpush.bf16.msra.mxu0 %v114_v1 }
  0x13   :  { %113 = vmatmul.msk.bf16.vlgmr.msra.gmra.mxu0 %vm68_vm0, %v47_v3 }
  0x90   :  { %v81_v5 = vpop.f32.mrf.mxu0 }
  0x91   :  { %v82_v6 = vadd.f32 %v121_v4, %v81_v5 }
  0x93   :  { %86 = vst.msk [vmem:[#allocation7] sm:$0x3] %vm85_vm1, %v82_v6 }
  0x94   :  { %97 = dma.vmem_to_hbm [thread:$0]  %s93_s25, 32, %s95_s28, [#allocation4]  }
  0x98   :  { %v83_v7 = vpop.f32.mrf.mxu0 }
  0x99   :  { %198 = dma.done.wait [#allocation4], 32  }
  0x9a   :  { %199 = vsyncadd [#allocation4], 4294967264 }
  0x9b   :  { %102 = vsyncpa [#allocation3], 1 }
  0x9c   :  { %103 = vsyncpa [#allocation6], 1 }
  0x9d   :  { %104 = vsyncpa [#allocation4], 1 }

</bundles_post_ra>
